<compile_context>
chip_gen: v6e
topology: v6e:2x2x1
jax: 0.10.0
libtpu: 0.0.40
codegen_flags: <defaults>
</compile_context>

<pallas_src>
import functools
import math

import numpy as np
import jax
import jax.numpy as jnp
from jax import lax
from jax.experimental import pallas as pl
from jax.experimental.pallas import tpu as pltpu

F32 = jnp.float32
CDT = jnp.bfloat16            # MXU compute dtype (accumulation always f32)
NEG_INF = -1e30               # stands in for float('-inf'); exp() underflows to exactly 0 in f32
LN_EPS = 1e-5
SOFTMAX_APPROX_RECIP = True   # set False for exact-division parity with PyTorch softmax


# ----------------------------- small helpers -----------------------------

def _round_up(x, m):
    return (x + m - 1) // m * m


def _tile_rows(M, tile_m):
    """Pad row count to a multiple of 16 (bf16 sublane packing) and pick a row tile."""
    Mp = _round_up(M, 16)
    tm = min(tile_m, Mp)
    Mp = _round_up(Mp, tm)
    return Mp, tm


def _pad_rows(x, Mp):
    M = x.shape[0]
    if Mp == M:
        return x
    return jnp.pad(x, ((0, Mp - M),) + ((0, 0),) * (x.ndim - 1))


def _cp(n_par, vmem_mb=None):
    kw = {"dimension_semantics": ("parallel",) * n_par}
    if vmem_mb is not None:
        kw["vmem_limit_bytes"] = vmem_mb * 1024 * 1024
    return pltpu.CompilerParams(**kw)


def _full_spec(a):
    """BlockSpec covering the whole (weight) array, resident across all grid steps."""
    zeros = (0,) * a.ndim
    return pl.BlockSpec(a.shape, lambda b: zeros)


def _softmax_lastdim(s):
    m = jnp.max(s, axis=-1, keepdims=True)
    p = jnp.exp(s - m)
    d = jnp.sum(p, axis=-1, keepdims=True)
    if SOFTMAX_APPROX_RECIP:
        return p * pl.reciprocal(d, approx=True)
    return p / d


def _stable_sigmoid(y):
    z = jnp.exp(-jnp.abs(y))
    return jnp.where(y >= 0, 1.0 / (1.0 + z), z / (1.0 + z))


# ----------------------------- LayerNorm kernels -----------------------------

def _ln_kernel(x_ref, o_ref, *, eps):
    x = x_ref[...].astype(F32)
    mu = jnp.mean(x, axis=-1, keepdims=True)
    var = jnp.mean((x - mu) ** 2, axis=-1, keepdims=True)
    o_ref[...] = ((x - mu) * lax.rsqrt(var + eps)).astype(o_ref.dtype)


def _ln_affine_kernel(x_ref, g_ref, b_ref, o_ref, *, eps):
    x = x_ref[...].astype(F32)
    mu = jnp.mean(x, axis=-1, keepdims=True)
    var = jnp.mean((x - mu) ** 2, axis=-1, keepdims=True)
    y = (x - mu) * lax.rsqrt(var + eps)
    o_ref[...] = (y * g_ref[...] + b_ref[...]).astype(o_ref.dtype)


@jax.jit
def pl_layernorm(x2d, gamma=None, beta=None, eps=LN_EPS, tile_m=1024):
    M, C = x2d.shape
    Mp, tm = _tile_rows(M, tile_m)
    xp = _pad_rows(x2d, Mp)
    row_spec = pl.BlockSpec((tm, C), lambda i: (i, 0))
    vec_spec = pl.BlockSpec((1, C), lambda i: (0, 0))
    if gamma is None:
        out = pl.pallas_call(
            functools.partial(_ln_kernel, eps=eps),
            grid=(Mp // tm,), in_specs=[row_spec], out_specs=row_spec,
            out_shape=jax.ShapeDtypeStruct((Mp, C), F32),
            compiler_params=_cp(1))(xp)
    else:
        out = pl.pallas_call(
            functools.partial(_ln_affine_kernel, eps=eps),
            grid=(Mp // tm,), in_specs=[row_spec, vec_spec, vec_spec], out_specs=row_spec,
            out_shape=jax.ShapeDtypeStruct((Mp, C), F32),
            compiler_params=_cp(1))(
            xp, gamma.reshape(1, C).astype(F32), beta.reshape(1, C).astype(F32))
    return out if Mp == M else out[:M]


# ----------------------------- fused attention sub-layer -----------------------------

def _mha_block_body(x, qin, kin, vin, bias, wq, bq, wk, bk, wv, bv, wo, bo, g, be,
                    o_ref, *, H, scale, eps):
    """x: residual (Lq, C) f32; qin/kin/vin: projection inputs; bias: (1, Lk) f32 or None.
    Per-head weights indexed on the leading dim (no lane slicing / in-kernel reshape)."""
    qin_c = qin.astype(CDT)
    kin_c = kin.astype(CDT)
    vin_c = vin.astype(CDT)
    acc = None
    for h in range(H):
        q = (jnp.dot(qin_c, wq[h], preferred_element_type=F32) + bq[h]) * scale   # (Lq, Dh)
        k = jnp.dot(kin_c, wk[h], preferred_element_type=F32) + bk[h]             # (Lk, Dh)
        v = jnp.dot(vin_c, wv[h], preferred_element_type=F32) + bv[h]             # (Lk, Dh)
        s = lax.dot_general(q.astype(CDT), k.astype(CDT),
                            (((1,), (1,)), ((), ())),
                            preferred_element_type=F32)                            # (Lq, Lk)
        if bias is not None:
            s = s + bias
        p = _softmax_lastdim(s)
        oh = jnp.dot(p.astype(CDT), v.astype(CDT), preferred_element_type=F32)     # (Lq, Dh)
        contrib = jnp.dot(oh.astype(CDT), wo[h], preferred_element_type=F32)        # (Lq, C)
        acc = contrib if acc is None else acc + contrib
    y = x + acc + bo[...]
    mu = jnp.mean(y, axis=-1, keepdims=True)
    var = jnp.mean((y - mu) ** 2, axis=-1, keepdims=True)
    y = (y - mu) * lax.rsqrt(var + eps)
    o_ref[...] = (y * g[...] + be[...]).astype(o_ref.dtype)


def _self_attn_ln_kernel_masked(x_ref, pos_ref, mask_ref, wq, bq, wk, bk, wv, bv,
                                wo, bo, g, be, o_ref, *, H, scale, eps):
    x = x_ref[...].astype(F32)
    qin = x + pos_ref[...].astype(F32)
    bias = mask_ref[...] * NEG_INF                       # (1, Lk), 1.0 = padded key
    _mha_block_body(x, qin, qin, x, bias, wq, bq, wk, bk, wv, bv, wo, bo, g, be,
                    o_ref, H=H, scale=scale, eps=eps)


def _self_attn_ln_kernel_nomask(x_ref, pos_ref, wq, bq, wk, bk, wv, bv,
                                wo, bo, g, be, o_ref, *, H, scale, eps):
    x = x_ref[...].astype(F32)
    qin = x + pos_ref[...].astype(F32)
    _mha_block_body(x, qin, qin, x, None, wq, bq, wk, bk, wv, bv, wo, bo, g, be,
                    o_ref, H=H, scale=scale, eps=eps)


def _cross_attn_ln_kernel(x_ref, qpos_ref, ksrc_ref, vsrc_ref, mask_ref, wq, bq, wk, bk,
                          wv, bv, wo, bo, g, be, o_ref, *, H, scale, eps):
    x = x_ref[...].astype(F32)
    qin = x + qpos_ref[...].astype(F32)
    kin = ksrc_ref[...].astype(F32)
    vin = vsrc_ref[...].astype(F32)
    bias = mask_ref[...] * NEG_INF
    _mha_block_body(x, qin, kin, vin, bias, wq, bq, wk, bk, wv, bv, wo, bo, g, be,
                    o_ref, H=H, scale=scale, eps=eps)


@functools.partial(jax.jit, static_argnames=("num_heads",))
def pl_self_attn_block(x, pos, pad_mask, mp, ln, *, num_heads):
    """LayerNorm(x + OutProj(MHA(q=x+pos, k=x+pos, v=x))) — the whole attention sub-layer.
    x, pos: (bs, L, C); pad_mask: (bs, L) f32 (1.0 = padded) or None."""
    bs, L, C = x.shape
    Dh = C // num_heads
    scale = 1.0 / math.sqrt(Dh)
    seq_spec = pl.BlockSpec((None, L, C), lambda b: (b, 0, 0))
    w_in = [mp["wq"], mp["bq"], mp["wk"], mp["bk"], mp["wv"], mp["bv"],
            mp["wo"], mp["bo"], ln["g"], ln["b"]]
    w_specs = [_full_spec(a) for a in w_in]
    if pad_mask is not None:
        kern = functools.partial(_self_attn_ln_kernel_masked, H=num_heads, scale=scale, eps=LN_EPS)
        extra_in = [pad_mask]
        extra_specs = [pl.BlockSpec((1, L), lambda b: (b, 0))]
    else:
        # no-mask specialization: skip the mask DMA and the (Lq, Lk) bias add
        kern = functools.partial(_self_attn_ln_kernel_nomask, H=num_heads, scale=scale, eps=LN_EPS)
        extra_in = []
        extra_specs = []
    ce = pl.CostEstimate(
        flops=bs * (8 * L * C * C + 4 * num_heads * L * L * Dh),
        transcendentals=bs * num_heads * L * L,
        bytes_accessed=2 * x.size * 4 + pos.size * 4 + sum(int(a.size) for a in w_in) * 2)
    # TODO(synk): for very large feature maps add an Lk-streaming (flash-style) axis; at PnP's
    # sampled sequence lengths the full per-head (Lq, Lk) scores fit comfortably in VMEM.
    return pl.pallas_call(
        kern,
        grid=(bs,),
        in_specs=[seq_spec, seq_spec] + extra_specs + w_specs,
        out_specs=seq_spec,
        out_shape=jax.ShapeDtypeStruct((bs, L, C), F32),
        compiler_params=_cp(1, vmem_mb=48),
        cost_estimate=ce,
    )(x, pos, *extra_in, *w_in)


@functools.partial(jax.jit, static_argnames=("num_heads",))
def pl_cross_attn_block(x, qpos, ksrc, vsrc, pad_mask, mp, ln, *, num_heads):
    """LayerNorm(x + OutProj(MHA(q=x+qpos, k=ksrc, v=vsrc))), key padding mask applied."""
    bs, Lq, C = x.shape
    Lk = ksrc.shape[1]
    Dh = C // num_heads
    scale = 1.0 / math.sqrt(Dh)
    q_spec = pl.BlockSpec((None, Lq, C), lambda b: (b, 0, 0))
    k_spec = pl.BlockSpec((None, Lk, C), lambda b: (b, 0, 0))
    w_in = [mp["wq"], mp["bq"], mp["wk"], mp["bk"], mp["wv"], mp["bv"],
            mp["wo"], mp["bo"], ln["g"], ln["b"]]
    w_specs = [_full_spec(a) for a in w_in]
    ce = pl.CostEstimate(
        flops=bs * (4 * Lq * C * C + 4 * Lk * C * C + 4 * num_heads * Lq * Lk * Dh),
        transcendentals=bs * num_heads * Lq * Lk,
        bytes_accessed=(2 * x.size + qpos.size + ksrc.size + vsrc.size) * 4
                       + sum(int(a.size) for a in w_in) * 2)
    return pl.pallas_call(
        functools.partial(_cross_attn_ln_kernel, H=num_heads, scale=scale, eps=LN_EPS),
        grid=(bs,),
        in_specs=[q_spec, q_spec, k_spec, k_spec,
                  pl.BlockSpec((1, Lk), lambda b: (b, 0))] + w_specs,
        out_specs=q_spec,
        out_shape=jax.ShapeDtypeStruct((bs, Lq, C), F32),
        compiler_params=_cp(1, vmem_mb=48),
        cost_estimate=ce,
    )(x, qpos, ksrc, vsrc, pad_mask, *w_in)


# ----------------------------- fused FFN + residual + LayerNorm -----------------------------

def _ffn_add_ln_kernel(x_ref, w1, b1, w2, b2, g, be, o_ref, *, eps):
    xf = x_ref[...].astype(F32)
    hdn = jnp.maximum(jnp.dot(xf.astype(CDT), w1[...],
                              preferred_element_type=F32) + b1[...], 0.0)
    y = jnp.dot(hdn.astype(CDT), w2[...], preferred_element_type=F32) + b2[...] + xf
    mu = jnp.mean(y, axis=-1, keepdims=True)
    var = jnp.mean((y - mu) ** 2, axis=-1, keepdims=True)
    y = (y - mu) * lax.rsqrt(var + eps)
    o_ref[...] = (y * g[...] + be[...]).astype(o_ref.dtype)


@jax.jit
def pl_ffn_add_ln(x, p1, p2, ln, eps=LN_EPS, tile_m=256):
    """LayerNorm(x + Linear2(relu(Linear1(x)))): FFN hidden never leaves VMEM."""
    M, C = x.shape
    Fh = p1["w"].shape[1]
    Mp, tm = _tile_rows(M, tile_m)
    ce = pl.CostEstimate(flops=4 * Mp * C * Fh, transcendentals=0,
                         bytes_accessed=Mp * C * 8 + C * Fh * 4)
    out = pl.pallas_call(
        functools.partial(_ffn_add_ln_kernel, eps=eps),
        grid=(Mp // tm,),
        in_specs=[pl.BlockSpec((tm, C), lambda i: (i, 0)),
                  pl.BlockSpec((C, Fh), lambda i: (0, 0)),
                  pl.BlockSpec((1, Fh), lambda i: (0, 0)),
                  pl.BlockSpec((Fh, C), lambda i: (0, 0)),
                  pl.BlockSpec((1, C), lambda i: (0, 0)),
                  pl.BlockSpec((1, C), lambda i: (0, 0)),
                  pl.BlockSpec((1, C), lambda i: (0, 0))],
        out_specs=pl.BlockSpec((tm, C), lambda i: (i, 0)),
        out_shape=jax.ShapeDtypeStruct((Mp, C), F32),
        compiler_params=_cp(1, vmem_mb=32),
        cost_estimate=ce,
    )(_pad_rows(x, Mp), p1["w"], p1["b"], p2["w"], p2["b"], ln["g"], ln["b"])
    return out if Mp == M else out[:M]


# ----------------------------- sampler kernels -----------------------------

def _score_kernel(x_ref, w1, b1, w2, b2, o_ref):
    x = x_ref[...].astype(CDT)
    h = jnp.maximum(jnp.dot(x, w1[...], preferred_element_type=F32) + b1[...], 0.0)
    s = jnp.sum(h * w2[...], axis=-1, keepdims=True) + b2[...]     # (tm, 1)
    o_ref[...] = _stable_sigmoid(s).astype(o_ref.dtype)


@jax.jit
def pl_score(x2d, sp, tile_m=512):
    """Fused score_pred_net '2layer-fc-256' (two 1x1 convs == per-pixel MLP) + sigmoid."""
    M, K = x2d.shape
    Ch = sp["score1_w"].shape[1]
    Mp, tm = _tile_rows(M, tile_m)
    # TODO(synk): the (tm, 1) output column lowers to masked partial stores; making it lane-dense
    # would need an in-kernel (tm,1)->(1,tm) relayout — not worth the risk for a bs*h*w tensor.
    out = pl.pallas_call(
        _score_kernel,
        grid=(Mp // tm,),
        in_specs=[pl.BlockSpec((tm, K), lambda i: (i, 0)),
                  pl.BlockSpec((K, Ch), lambda i: (0, 0)),
                  pl.BlockSpec((1, Ch), lambda i: (0, 0)),
                  pl.BlockSpec((1, Ch), lambda i: (0, 0)),
                  pl.BlockSpec((1, 1), lambda i: (0, 0))],
        out_specs=pl.BlockSpec((tm, 1), lambda i: (i, 0)),
        out_shape=jax.ShapeDtypeStruct((Mp, 1), F32),
        compiler_params=_cp(1),
    )(_pad_rows(x2d, Mp), sp["score1_w"], sp["score1_b"], sp["score2_w"], sp["score2_b"])
    return out[:M, 0]


def _abstract_kernel(src_ref, pos_ref, m_ref, w1, b1, w2t, b2, wv, bv, pts_ref, apos_ref):
    x = src_ref[...].astype(CDT)                                  # (L_rem, C)
    h = jnp.maximum(jnp.dot(x, w1[...], preferred_element_type=F32) + b1[...], 0.0)
    # scores computed directly in (n_abs, L_rem) layout (contract over C of w2^T and h)
    s = lax.dot_general(w2t[...], h.astype(CDT), (((1,), (1,)), ((), ())),
                        preferred_element_type=F32)               # (n_abs, L_rem)
    s = s + b2[...]                                               # (n_abs, 1) bias column
    s = s + m_ref[...] * NEG_INF                                  # (1, L_rem) padding mask
    kp = _softmax_lastdim(s)                                      # stays in VMEM
    vp = jnp.dot(x, wv[...], preferred_element_type=F32) + bv[...]  # (L_rem, C)
    kpc = kp.astype(CDT)
    pts_ref[...] = jnp.dot(kpc, vp.astype(CDT),
                           preferred_element_type=F32).astype(pts_ref.dtype)
    apos_ref[...] = jnp.dot(kpc, pos_ref[...].astype(CDT),
                            preferred_element_type=F32).astype(apos_ref.dtype)


@jax.jit
def pl_abstract(src_rem, pos_rem, mask_rem, sp):
    """Fused sampler tail: k_proj (2-layer) -> masked softmax over remaining tokens ->
    v_proj -> both (kp @ .) contractions; one batch element per grid step, kp never leaves VMEM.
    src_rem/pos_rem: (bs, L_rem, C); mask_rem: (bs, L_rem) f32 (1.0 = excluded)."""
    bs, L_rem, C = src_rem.shape
    n_abs = sp["kproj2_wt"].shape[0]
    seq_spec = pl.BlockSpec((None, L_rem, C), lambda b: (b, 0, 0))
    out_spec = pl.BlockSpec((None, n_abs, C), lambda b: (b, 0, 0))
    pts, apos = pl.pallas_call(
        _abstract_kernel,
        grid=(bs,),
        in_specs=[seq_spec, seq_spec,
                  pl.BlockSpec((1, L_rem), lambda b: (b, 0)),
                  _full_spec(sp["kproj1_w"]), _full_spec(sp["kproj1_b"]),
                  _full_spec(sp["kproj2_wt"]), _full_spec(sp["kproj2_b"]),
                  _full_spec(sp["vproj_w"]), _full_spec(sp["vproj_b"])],
        out_specs=[out_spec, out_spec],
        out_shape=(jax.ShapeDtypeStruct((bs, n_abs, C), F32),
                   jax.ShapeDtypeStruct((bs, n_abs, C), F32)),
        compiler_params=_cp(1, vmem_mb=48),
    )(src_rem, pos_rem, mask_rem,
      sp["kproj1_w"], sp["kproj1_b"], sp["kproj2_wt"], sp["kproj2_b"],
      sp["vproj_w"], sp["vproj_b"])
    return pts, apos


# ----------------------------- encoder / decoder -----------------------------

def encoder_forward(x, pos, pad_mask_f32, layers, num_heads):
    # post-norm DETR encoder layer: self-attn(q=k=x+pos, v=x) -> +res -> LN -> FFN -> +res -> LN
    bs, L, C = x.shape
    for p in layers:
        x2 = pl_self_attn_block(x, pos, pad_mask_f32, p["attn"], p["norm1"], num_heads=num_heads)
        x = pl_ffn_add_ln(x2.reshape(bs * L, C), p["ffn1"], p["ffn2"],
                          p["norm2"]).reshape(bs, L, C)
    return x


def decoder_forward(tgt, memory, query_pos, key_pos, pad_mask_f32, layers, final_norm, num_heads):
    # post-norm DETR decoder with return_intermediate
    bs, nq, C = tgt.shape
    mem_k = memory + key_pos            # hoisted out of the layer loop
    x = tgt
    outs = []
    for p in layers:
        x2 = pl_self_attn_block(x, query_pos, None, p["self_attn"], p["norm1"],
                                num_heads=num_heads)
        x3 = pl_cross_attn_block(x2, query_pos, mem_k, memory, pad_mask_f32,
                                 p["cross_attn"], p["norm2"], num_heads=num_heads)
        x = pl_ffn_add_ln(x3.reshape(bs * nq, C), p["ffn1"], p["ffn2"],
                          p["norm3"]).reshape(bs, nq, C)
        outs.append(pl_layernorm(x.reshape(bs * nq, C),
                                 final_norm["g"], final_norm["b"]).reshape(bs, nq, C))
    return jnp.stack(outs, axis=0)      # (num_layers, bs, nq, C)


# ----------------------------- SortSampler -----------------------------

def sort_sampler_forward(src, mask_np, pos_bl, sample_ratio, sp, topk_ratio, n_abs):
    """src: (bs, c, h, w) device; mask_np: (bs, h*w) host numpy bool; pos_bl: (bs, L, c) device."""
    bs, c, h, w = src.shape
    L = h * w
    if sample_ratio is None:
        sample_ratio = topk_ratio

    # Sample lengths depend only on the padding mask, which lives on the host (it determines the
    # static shapes of everything downstream) -> pure numpy, no device->host sync.
    sample_lens_np = ((~mask_np).sum(axis=1) * sample_ratio).astype(np.int64)
    max_sample_num = int(sample_lens_np.max())
    min_sample_num = int(sample_lens_np.min())
    L_rem = L - min_sample_num
    mask_dev = jnp.asarray(mask_np)

    # score_pred_net '2layer-fc-256' (two 1x1 convs) + sigmoid, fused in one kernel
    src_bl = src.transpose(0, 2, 3, 1).reshape(bs, L, c)               # batch-major (bs, L, c)
    sample_weight = pl_score(src_bl.reshape(bs * L, c), sp).reshape(bs, L)
    sample_weight_clone = jnp.where(mask_dev, -1.0, sample_weight)

    # host-side masks that depend only on sample_lens
    mask_topk_np = np.arange(max_sample_num)[None, :] > (sample_lens_np - 1)[:, None]
    keep_first_np = np.arange(L)[None, :] < sample_lens_np[:, None]

    # TODO(synk): argsort + content-dependent row gathers stay in XLA; a scalar-prefetch DMA
    # gather (per-row make_async_copy driven by SMEM indices) is the next step if these dominate.
    sort_order = jnp.argsort(-sample_weight_clone, axis=1)             # descending
    sort_confidence_topk = sort_order[:, :max_sample_num]

    src_seq = pl_layernorm(src_bl.reshape(bs * L, c)).reshape(bs, L, c)  # LayerNorm, no affine

    # one gather over the full sort order serves both the top-k prefix and the remaining suffix
    idx_full = jnp.broadcast_to(sort_order[:, :, None], (bs, L, c))
    src_sorted = jnp.take_along_axis(src_seq, idx_full, axis=1)
    pos_sorted = jnp.take_along_axis(pos_bl, idx_full, axis=1)

    sw_topk = jnp.take_along_axis(sample_weight, sort_confidence_topk, axis=1)   # (bs, max_k)
    sample_reg_loss = jnp.mean(sw_topk)

    src_sampled = src_sorted[:, :max_sample_num] * sw_topk[:, :, None]
    pos_sampled = pos_sorted[:, :max_sample_num]
    src_rem = src_sorted[:, min_sample_num:]                           # (bs, L_rem, c)
    pos_rem = pos_sorted[:, min_sample_num:]

    mask_unsampled = jnp.asarray(keep_first_np) | jnp.take_along_axis(mask_dev, sort_order, axis=1)
    mask_unsampled = mask_unsampled[:, min_sample_num:]                # (bs, L_rem)

    # fused kproj -> masked softmax -> vproj -> bmm(kp, v) & bmm(kp, pos) (kp stays in VMEM)
    pts, apos = pl_abstract(src_rem, pos_rem, mask_unsampled.astype(F32), sp)    # (bs, n_abs, c)

    src_out = jnp.concatenate([src_sampled, pts], axis=1)              # (bs, max_k + n_abs, c)
    pos_out = jnp.concatenate([pos_sampled, apos], axis=1)
    mask_out = jnp.concatenate([jnp.asarray(mask_topk_np),
                                jnp.zeros((bs, n_abs), dtype=jnp.bool_)], axis=1)
    # Structural invariant (~mask_out).sum(1) == sample_lens + n_abs holds by construction;
    # the reference's device-side assert is dropped to avoid a host sync in the forward path.
    return src_out, sample_reg_loss, sort_confidence_topk, mask_out, pos_out


# ----------------------------- PnPDetrTransformer -----------------------------

def pnp_detr_transformer_forward(x, mask_np, query_embed, pos_embed, sample_ratio, params, cfg):
    """x, pos_embed: (bs, c, h, w) device; mask_np: (bs, h, w) host numpy bool;
    query_embed: (nq, c) device. Returns ((layers, bs, nq, c), scalar)."""
    bs, c, h, w = x.shape
    L = h * w
    pos_bl = pos_embed.transpose(0, 2, 3, 1).reshape(bs, L, c)     # batch-major (bs, L, c)
    nq = query_embed.shape[0]
    query_pos = jnp.broadcast_to(query_embed[None, :, :], (bs, nq, c))
    mask_flat_np = np.asarray(mask_np).astype(bool).reshape(bs, -1)

    src, sample_reg_loss, _topk, mask_s, pos_s = sort_sampler_forward(
        x, mask_flat_np, pos_bl, sample_ratio, params["sampler"],
        cfg["topk_ratio"], cfg["n_abs"])

    pad_f32 = mask_s.astype(F32)                                   # 1.0 = padded key
    memory = encoder_forward(src, pos_s, pad_f32, params["encoder"], cfg["num_heads"])
    target = jnp.zeros_like(query_pos)
    dec = decoder_forward(target, memory, query_pos, pos_s, pad_f32,
                          params["decoder"], params["dec_norm"], cfg["num_heads"])
    # dec is already (layers, bs, nq, c) == reference's decoder_output.transpose(1, 2)
    return dec, sample_reg_loss


# ----------------------------- parameters -----------------------------

def xavier_uniform(key, shape):
    fan_in, fan_out = shape
    limit = math.sqrt(6.0 / (fan_in + fan_out))
    return jax.random.uniform(key, shape, F32, -limit, limit)


def init_params(key, c, ffn_dim, n_abs, num_enc_layers, num_dec_layers):
    keys = iter(jax.random.split(key, 512))

    def lin(i, o):
        return {"w": xavier_uniform(next(keys), (i, o)), "b": jnp.zeros((o,), F32)}

    def mha_p():
        return {"q": lin(c, c), "k": lin(c, c), "v": lin(c, c), "o": lin(c, c)}

    def ln_p():
        return {"g": jnp.ones((c,), F32), "b": jnp.zeros((c,), F32)}

    return {
        "sampler": {
            "score1": lin(c, c), "score2": lin(c, 1),
            "kproj1": lin(c, c), "kproj2": lin(c, n_abs),
            "vproj": lin(c, c),
        },
        "encoder": [
            {"attn": mha_p(), "norm1": ln_p(),
             "ffn1": lin(c, ffn_dim), "ffn2": lin(ffn_dim, c), "norm2": ln_p()}
            for _ in range(num_enc_layers)],
        "decoder": [
            {"self_attn": mha_p(), "norm1": ln_p(),
             "cross_attn": mha_p(), "norm2": ln_p(),
             "ffn1": lin(c, ffn_dim), "ffn2": lin(ffn_dim, c), "norm3": ln_p()}
            for _ in range(num_dec_layers)],
        "dec_norm": ln_p(),
    }


def prepare_params(raw, num_heads):
    """One-time conversion to kernel-ready layout: bf16 weights, (1, N) f32 biases, per-head
    split attention weights. Runs once, outside the forward path."""
    def lin(p):
        return {"w": p["w"].astype(CDT), "b": p["b"].reshape(1, -1).astype(F32)}

    def ln(p):
        return {"g": p["g"].reshape(1, -1).astype(F32), "b": p["b"].reshape(1, -1).astype(F32)}

    def mha(p):
        C = p["q"]["w"].shape[0]
        Dh = C // num_heads

        def w_in(w):     # (C, C) -> (H, C, Dh)
            return w.reshape(C, num_heads, Dh).transpose(1, 0, 2).astype(CDT)

        def b_in(b):     # (C,) -> (H, 1, Dh)
            return b.reshape(num_heads, 1, Dh).astype(F32)

        return {"wq": w_in(p["q"]["w"]), "bq": b_in(p["q"]["b"]),
                "wk": w_in(p["k"]["w"]), "bk": b_in(p["k"]["b"]),
                "wv": w_in(p["v"]["w"]), "bv": b_in(p["v"]["b"]),
                "wo": p["o"]["w"].reshape(num_heads, Dh, C).astype(CDT),   # (H, Dh, C)
                "bo": p["o"]["b"].reshape(1, C).astype(F32)}

    sam = raw["sampler"]
    C = sam["kproj1"]["w"].shape[0]
    ch = sam["score1"]["w"].shape[1]
    n_abs = sam["kproj2"]["w"].shape[1]
    sampler = {
        "score1_w": sam["score1"]["w"].astype(CDT),
        "score1_b": sam["score1"]["b"].reshape(1, ch).astype(F32),
        "score2_w": sam["score2"]["w"].reshape(1, ch).astype(F32),
        "score2_b": sam["score2"]["b"].reshape(1, 1).astype(F32),
        "kproj1_w": sam["kproj1"]["w"].astype(CDT),
        "kproj1_b": sam["kproj1"]["b"].reshape(1, C).astype(F32),
        "kproj2_wt": sam["kproj2"]["w"].T.astype(CDT),                     # (n_abs, C)
        "kproj2_b": sam["kproj2"]["b"].reshape(n_abs, 1).astype(F32),
        "vproj_w": sam["vproj"]["w"].astype(CDT),
        "vproj_b": sam["vproj"]["b"].reshape(1, C).astype(F32),
    }
    enc = [{"attn": mha(l["attn"]), "norm1": ln(l["norm1"]),
            "ffn1": lin(l["ffn1"]), "ffn2": lin(l["ffn2"]), "norm2": ln(l["norm2"])}
           for l in raw["encoder"]]
    dec = [{"self_attn": mha(l["self_attn"]), "norm1": ln(l["norm1"]),
            "cross_attn": mha(l["cross_attn"]), "norm2": ln(l["norm2"]),
            "ffn1": lin(l["ffn1"]), "ffn2": lin(l["ffn2"]), "norm3": ln(l["norm3"])}
           for l in raw["decoder"]]
    return {"sampler": sampler, "encoder": enc, "decoder": dec, "dec_norm": ln(raw["dec_norm"])}


# ----------------------------- main -----------------------------

if __name__ == "__main__":
    bs, c, h, w = 2, 32, 8, 8
    num_heads = 4
    ffn_dim = 64
    n_abs = 8                 # unsample_abstract_number (small synthetic value)
    num_queries = 16
    topk_ratio = 1.0 / 3.0
    cfg = dict(topk_ratio=topk_ratio, n_abs=n_abs, num_heads=num_heads)

    key = jax.random.PRNGKey(0)
    kx, kq, kp, kparam = jax.random.split(key, 4)
    x = jax.random.normal(kx, (bs, c, h, w), F32)
    pos_embed = jax.random.normal(kp, (bs, c, h, w), F32)
    query_embed = jax.random.normal(kq, (num_queries, c), F32)

    # padding mask is a host-side numpy array (it determines static shapes downstream)
    mask_np = np.zeros((bs, h, w), dtype=bool)
    mask_np[1, -1, :] = True          # batch 1: last spatial row is padding

    raw_params = init_params(kparam, c, ffn_dim, n_abs, num_enc_layers=1, num_dec_layers=2)
    params = prepare_params(raw_params, num_heads)   # one-time bf16 cast + per-head weight split

    decoder_output, sample_reg_loss = pnp_detr_transformer_forward(
        x, mask_np, query_embed, pos_embed, 0.5, params, cfg)
    jax.block_until_ready(decoder_output)
    jax.block_until_ready(sample_reg_loss)

    assert decoder_output.shape == (2, bs, num_queries, c)
    assert bool(jnp.isfinite(decoder_output).all())
    assert bool(jnp.isfinite(sample_reg_loss))
    print("KERNEL_OK")
</pallas_src>

<mosaic_0001>
module attributes {stable_mosaic.version = 11 : i64} {
  func.func @_score_kernel(%arg0: i32, %arg1: memref<128x32xf32, #tpu.memory_space<vmem>>, %arg2: memref<32x32xbf16, #tpu.memory_space<vmem>>, %arg3: memref<1x32xf32, #tpu.memory_space<vmem>>, %arg4: memref<1x32xf32, #tpu.memory_space<vmem>>, %arg5: memref<1x1xf32, #tpu.memory_space<vmem>>, %arg6: memref<128x1xf32, #tpu.memory_space<vmem>>) attributes {dimension_semantics = [#tpu.dimension_semantics<parallel>], iteration_bounds = array<i64: 1>, scalar_prefetch = 0 : i64, scratch_operands = 0 : i64, tpu.core_type = #tpu.core_type<tc>, window_params = [{transform_indices = @transform_0, window_bounds = array<i64: 128, 32>}, {pipeline_mode = #tpu.pipeline_mode<synchronous>, transform_indices = @transform_1, window_bounds = array<i64: 32, 32>}, {pipeline_mode = #tpu.pipeline_mode<synchronous>, transform_indices = @transform_2, window_bounds = array<i64: 1, 32>}, {pipeline_mode = #tpu.pipeline_mode<synchronous>, transform_indices = @transform_3, window_bounds = array<i64: 1, 32>}, {pipeline_mode = #tpu.pipeline_mode<synchronous>, transform_indices = @transform_4, window_bounds = array<i64: 1, 1>}, {transform_indices = @transform_5, window_bounds = array<i64: 128, 1>}]} {
    %c0 = arith.constant 0 : index
    %c0_0 = arith.constant 0 : index
    %0 = vector.load %arg1[%c0, %c0_0] : memref<128x32xf32, #tpu.memory_space<vmem>>, vector<128x32xf32>
    %1 = arith.truncf %0 : vector<128x32xf32> to vector<128x32xbf16>
    %c0_1 = arith.constant 0 : index
    %c0_2 = arith.constant 0 : index
    %2 = vector.load %arg2[%c0_1, %c0_2] : memref<32x32xbf16, #tpu.memory_space<vmem>>, vector<32x32xbf16>
    %cst = arith.constant dense<0.000000e+00> : vector<128x32xf32>
    %3 = tpu.matmul %1, %2, %cst {dimension_numbers = #tpu.dot_dimension_numbers<[1], [0], [0], [1], [0, 0, 1, 1], [], []>} : vector<128x32xbf16>, vector<32x32xbf16>, vector<128x32xf32> -> vector<128x32xf32>
    %c0_3 = arith.constant 0 : index
    %c0_4 = arith.constant 0 : index
    %4 = vector.load %arg3[%c0_3, %c0_4] : memref<1x32xf32, #tpu.memory_space<vmem>>, vector<1x32xf32>
    %5 = vector.broadcast %4 : vector<1x32xf32> to vector<128x32xf32>
    %6 = arith.addf %3, %5 : vector<128x32xf32>
    %cst_5 = arith.constant 0.000000e+00 : f32
    %7 = vector.broadcast %cst_5 : f32 to vector<128x32xf32>
    %8 = arith.maximumf %6, %7 : vector<128x32xf32>
    %c0_6 = arith.constant 0 : index
    %c0_7 = arith.constant 0 : index
    %9 = vector.load %arg4[%c0_6, %c0_7] : memref<1x32xf32, #tpu.memory_space<vmem>>, vector<1x32xf32>
    %10 = vector.broadcast %9 : vector<1x32xf32> to vector<128x32xf32>
    %11 = arith.mulf %8, %10 : vector<128x32xf32>
    %cst_8 = arith.constant dense<0.000000e+00> : vector<128xf32>
    %12 = vector.multi_reduction <add>, %11, %cst_8 [1] : vector<128x32xf32> to vector<128xf32>
    %13 = vector.shape_cast %12 : vector<128xf32> to vector<128x1xf32>
    %c0_9 = arith.constant 0 : index
    %c0_10 = arith.constant 0 : index
    %14 = vector.load %arg5[%c0_9, %c0_10] : memref<1x1xf32, #tpu.memory_space<vmem>>, vector<1x1xf32>
    %15 = vector.broadcast %14 : vector<1x1xf32> to vector<128x1xf32>
    %16 = arith.addf %13, %15 : vector<128x1xf32>
    %17 = math.absf %16 : vector<128x1xf32>
    %cst_11 = arith.constant 0.000000e+00 : f32
    %18 = vector.broadcast %cst_11 : f32 to vector<128x1xf32>
    %19 = arith.subf %18, %17 : vector<128x1xf32>
    %20 = math.exp %19 : vector<128x1xf32>
    %cst_12 = arith.constant 0.000000e+00 : f32
    %21 = vector.broadcast %cst_12 : f32 to vector<128x1xf32>
    %22 = arith.cmpf oge, %16, %21 : vector<128x1xf32>
    %cst_13 = arith.constant 1.000000e+00 : f32
    %23 = vector.broadcast %cst_13 : f32 to vector<128x1xf32>
    %24 = arith.addf %23, %20 : vector<128x1xf32>
    %cst_14 = arith.constant 1.000000e+00 : f32
    %25 = vector.broadcast %cst_14 : f32 to vector<128x1xf32>
    %26 = arith.divf %25, %24 : vector<128x1xf32>
    %cst_15 = arith.constant 1.000000e+00 : f32
    %27 = vector.broadcast %cst_15 : f32 to vector<128x1xf32>
    %28 = arith.addf %27, %20 : vector<128x1xf32>
    %29 = arith.divf %20, %28 : vector<128x1xf32>
    %30 = arith.select %22, %26, %29 : vector<128x1xi1>, vector<128x1xf32>
    %c0_16 = arith.constant 0 : index
    %c0_17 = arith.constant 0 : index
    %31 = vector.load %arg6[%c0_16, %c0_17] : memref<128x1xf32, #tpu.memory_space<vmem>>, vector<128x1xf32>
    tpu.vector_store %arg6[%c0_16, %c0_17], %30 {strides = array<i32>} : memref<128x1xf32, #tpu.memory_space<vmem>>, vector<128x1xf32>,
    return
  }
  func.func @transform_0(%arg0: i32) -> (i32, i32) {
    %c0_i32 = arith.constant 0 : i32
    %c0_i32_0 = arith.constant 0 : i32
    return %arg0, %c0_i32 : i32, i32
  }
  func.func @transform_1(%arg0: i32) -> (i32, i32) {
    %c0_i32 = arith.constant 0 : i32
    %c0_i32_0 = arith.constant 0 : i32
    %c0_i32_1 = arith.constant 0 : i32
    return %c0_i32, %c0_i32_0 : i32, i32
  }
  func.func @transform_2(%arg0: i32) -> (i32, i32) {
    %c0_i32 = arith.constant 0 : i32
    %c0_i32_0 = arith.constant 0 : i32
    %c0_i32_1 = arith.constant 0 : i32
    return %c0_i32, %c0_i32_0 : i32, i32
  }
  func.func @transform_3(%arg0: i32) -> (i32, i32) {
    %c0_i32 = arith.constant 0 : i32
    %c0_i32_0 = arith.constant 0 : i32
    %c0_i32_1 = arith.constant 0 : i32
    return %c0_i32, %c0_i32_0 : i32, i32
  }
  func.func @transform_4(%arg0: i32) -> (i32, i32) {
    %c0_i32 = arith.constant 0 : i32
    %c0_i32_0 = arith.constant 0 : i32
    %c0_i32_1 = arith.constant 0 : i32
    return %c0_i32, %c0_i32_0 : i32, i32
  }
  func.func @transform_5(%arg0: i32) -> (i32, i32) {
    %c0_i32 = arith.constant 0 : i32
    %c0_i32_0 = arith.constant 0 : i32
    return %arg0, %c0_i32 : i32, i32
  }
}

</mosaic_0001>

<bundles_post_ra>
// kernel: pl_score.1
= control target key start
LH: loop header
LB: loop body
LE: loop exit
PB: predicated region body
PF: predicated region fallthrough
CT: control target
= control target key end

     0   :  { %vm70_vm0 = vcmask 261120   ;;  %vm462_vm1 = vcmask 7168   ;;  %s931_s1 = inlined_call_operand.vmem [shape: bf16[32,32], index: 1, kind: input, shape index: {}]   ;;  %s932_s0 = inlined_call_operand.vmem [shape: f32[128,32], index: 0, kind: input, shape index: {}]   ;;  %s933_s4 = inlined_call_operand.<no memory space> [shape: f32[1,1], index: 4, kind: input, shape index: {}]   ;;  %s934_s2 = inlined_call_operand.vmem [shape: f32[1,32], index: 2, kind: input, shape index: {}]   ;;  %s935_s3 = inlined_call_operand.vmem [shape: f32[1,32], index: 3, kind: input, shape index: {}]   ;;  %s936_s5 = inlined_call_operand.vmem [shape: f32[128,1], index: 5, kind: output, shape index: {}]  }
   0x1   :  { %v530_v0 = vld [vmem:[%s931_s1 + $0x8] sm:$0xff]   ;;  %v531_v1 = vld [vmem:[%s931_s1] sm:$0xff]   ;;  %v25_v7 = vld [vmem:[%s932_s0 + $0x10] sm:$0xff]  ;;  %v10_v26 = vstv %s933_s4 }
   0x2   :  { %506 = vmatprep.subr.bf16.mxu0 %v530_v0  ;;  %526 = vmatprep.subr.bf16.mxu1 %v530_v0  ;;  %v23_v2 = vld [vmem:[%s932_s0] sm:$0xff]  ;;  %v24_v3 = vld [vmem:[%s932_s0 + $0x8] sm:$0xff]  ;;  %v26_v8 = vld [vmem:[%s932_s0 + $0x18] sm:$0xff]  ;;  %11 = vst [vmem:[#allocation2] sm:$0x1] %v10_v26 }
   0x3   :  { %v31_v4 = vld [vmem:[%s932_s0 + $0x40] sm:$0xff]  ;;  %507 = vmatpush3.bf16.msra.mxu0 %v530_v0  ;;  %528 = vmatpush3.bf16.msra.mxu1 %v530_v0  ;;  %v39_v5 = vpack.c.bf16 %v24_v3, %v23_v2  ;;  %v32_v6 = vld [vmem:[%s932_s0 + $0x48] sm:$0xff]  ;;  %v33_v10 = vld [vmem:[%s932_s0 + $0x50] sm:$0xff]  ;;  %v40_v14 = vpack.c.bf16 %v26_v8, %v25_v7 }
   0x4   :  { %508 = vmatprep.subr.bf16.mxu0 %v531_v1  ;;  %527 = vmatprep.subr.bf16.mxu1 %v531_v1  ;;  %v43_v9 = vpack.c.bf16 %v32_v6, %v31_v4  ;;  %v34_v11 = vld [vmem:[%s932_s0 + $0x58] sm:$0xff]  ;;  %v27_v12 = vld [vmem:[%s932_s0 + $0x20] sm:$0xff]  ;;  %v28_v13 = vld [vmem:[%s932_s0 + $0x28] sm:$0xff] }
   0x5   :  { %510 = vmatprep.mubr.msk.bf16.mxu0 %vm70_vm0, %v39_v5  ;;  %v44_v15 = vpack.c.bf16 %v34_v11, %v33_v10  ;;  %v35_v16 = vld [vmem:[%s932_s0 + $0x60] sm:$0xff]  ;;  %v36_v17 = vld [vmem:[%s932_s0 + $0x68] sm:$0xff]  ;;  %v41_v18 = vpack.c.bf16 %v28_v13, %v27_v12  ;;  %v29_v20 = vld [vmem:[%s932_s0 + $0x30] sm:$0xff] }
   0x6   :  { %518 = vmatprep.mubr.msk.bf16.mxu1 %vm70_vm0, %v43_v9  ;;  %v45_v19 = vpack.c.bf16 %v36_v17, %v35_v16  ;;  %v30_v21 = vld [vmem:[%s932_s0 + $0x38] sm:$0xff]  ;;  %v37_v22 = vld [vmem:[%s932_s0 + $0x70] sm:$0xff]  ;;  %v694_v27 = vld [vmem:[%s934_s2] ss:$0 sm:$0xff] }
   0x7   :  { %509 = vmatpush3.bf16.msra.mxu0 %v531_v1  ;;  %529 = vmatpush3.bf16.msra.mxu1 %v531_v1  ;;  %v38_v23 = vld [vmem:[%s932_s0 + $0x78] sm:$0xff]  ;;  %v42_v24 = vpack.c.bf16 %v30_v21, %v29_v20  ;;  %v703_v38 = vld [vmem:[%s935_s3] ss:$0 sm:$0xff] }
   0x8   :  { %v46_v25 = vpack.c.bf16 %v38_v23, %v37_v22 }
   0xa   :  { %511 = vmatmul.mubr.msk.bf16.vlgmr.msra.gmra.mxu0 %vm70_vm0, %v40_v14  ;;  %519 = vmatmul.mubr.msk.bf16.vlgmr.msra.gmra.mxu1 %vm70_vm0, %v44_v15 }
   0xb   :  { %514 = vmatprep.mubr.msk.bf16.mxu0 %vm70_vm0, %v41_v18  ;;  %522 = vmatprep.mubr.msk.bf16.mxu1 %vm70_vm0, %v45_v19 }
  0x12   :  { %515 = vmatmul.mubr.msk.bf16.gmra.mxu0 %vm70_vm0, %v42_v24  ;;  %523 = vmatmul.mubr.msk.bf16.gmra.mxu1 %vm70_vm0, %v46_v25 }
  0xca   :  { %v512_v28 = vpop.f32.mrf.mxu0  ;;  %v520_v29 = vpop.f32.mrf.mxu1 }
  0xcb   :  { %v138_v30 = vadd.f32 %v512_v28, %v694_v27  ;;  %v170_v31 = vadd.f32 %v520_v29, %v694_v27 }
  0xcc   :  { %v129_v32 = vpop.f32.mrf.mxu0  ;;  %v161_v33 = vpop.f32.mrf.mxu1 }
  0xcd   :  { %v194_v34 = vmax.f32 %v138_v30, 0.0  ;;  %v202_v35 = vmax.f32 %v170_v31, 0.0  ;;  %v130_v36 = vadd.f32 %v694_v27, %v129_v32  ;;  %v162_v37 = vadd.f32 %v694_v27, %v161_v33 }
  0xce   :  { %v513_v39 = vpop.f32.mrf.mxu0  ;;  %v521_v40 = vpop.f32.mrf.mxu1 }
  0xcf   :  { %v192_v41 = vmax.f32 %v130_v36, 0.0  ;;  %v141_v42 = vadd.f32 %v513_v39, %v694_v27  ;;  %v173_v43 = vadd.f32 %v521_v40, %v694_v27  ;;  %v225_v46 = vmul.f32 %v703_v38, %v202_v35 }
  0xd0   :  { %v132_v44 = vpop.f32.mrf.mxu0  ;;  %v164_v45 = vpop.f32.mrf.mxu1  ;;  %v217_v47 = vmul.f32 %v703_v38, %v194_v34  ;;  %v200_v48 = vmax.f32 %v162_v37, 0.0 }
  0xd1   :  { %v195_v49 = vmax.f32 %v141_v42, 0.0  ;;  %v203_v50 = vmax.f32 %v173_v43, 0.0  ;;  %v165_v51 = vadd.f32 %v694_v27, %v164_v45  ;;  %v133_v52 = vadd.f32 %v694_v27, %v132_v44 }
  0xd2   :  { %v261_v53 = vsel %vm70_vm0, %v225_v46, 0.0  ;;  %v237_v54 = vsel %vm70_vm0, %v217_v47, 0.0  ;;  %v516_v55 = vpop.f32.mrf.mxu0  ;;  %v524_v56 = vpop.f32.mrf.mxu1  ;;  %v215_v57 = vmul.f32 %v703_v38, %v192_v41  ;;  %v223_v63 = vmul.f32 %v703_v38, %v200_v48  ;;  %v749_v46 = vld [vmem:[#allocation2] ss:$0 sm:$0xff] }
  0xd3   :  { %262 = vadd.xlane.f32.xlu0 %v261_v53  ;;  %238 = vadd.xlane.f32.xlu1 %v237_v54  ;;  %v218_v59 = vmul.f32 %v703_v38, %v195_v49  ;;  %v201_v61 = vmax.f32 %v165_v51, 0.0  ;;  %v154_v62 = vadd.f32 %v516_v55, %v694_v27  ;;  %v193_v0 = vmax.f32 %v133_v52, 0.0 }
  0xd4   :  { %v145_v58 = vpop.f32.mrf.mxu0  ;;  %v177_v60 = vpop.f32.mrf.mxu1  ;;  %v231_v3 = vsel %vm70_vm0, %v215_v57, 0.0  ;;  %v226_v4 = vmul.f32 %v703_v38, %v203_v50  ;;  %v255_v10 = vsel %vm70_vm0, %v223_v63, 0.0  ;;  %v186_v25 = vadd.f32 %v524_v56, %v694_v27 }
  0xd5   :  { %v240_v1 = vsel %vm70_vm0, %v218_v59, 0.0  ;;  %v198_v8 = vmax.f32 %v154_v62, 0.0  ;;  %v146_v9 = vadd.f32 %v694_v27, %v145_v58  ;;  %v224_v11 = vmul.f32 %v703_v38, %v201_v61 }
  0xd6   :  { %v517_v2 = vpop.f32.mrf.mxu0  ;;  %v525_v6 = vpop.f32.mrf.mxu1  ;;  %v264_v14 = vsel %vm70_vm0, %v226_v4, 0.0  ;;  %v216_v15 = vmul.f32 %v703_v38, %v193_v0  ;;  %v178_v18 = vadd.f32 %v694_v27, %v177_v60  ;;  %v206_v34 = vmax.f32 %v186_v25, 0.0 }
  0xd7   :  { %241 = vadd.xlane.f32.xlu1 %v240_v1  ;;  %v157_v5 = vadd.f32 %v517_v2, %v694_v27  ;;  %232 = vadd.xlane.f32.xlu0 %v231_v3  ;;  %v196_v17 = vmax.f32 %v146_v9, 0.0  ;;  %v258_v19 = vsel %vm70_vm0, %v224_v11, 0.0  ;;  %v221_v20 = vmul.f32 %v703_v38, %v198_v8 }
  0xd8   :  { %v148_v7 = vpop.f32.mrf.mxu0  ;;  %v180_v16 = vpop.f32.mrf.mxu1  ;;  %v234_v23 = vsel %vm70_vm0, %v216_v15, 0.0  ;;  %v204_v26 = vmax.f32 %v178_v18, 0.0  ;;  %v189_v28 = vadd.f32 %v525_v6, %v694_v27  ;;  %v229_v43 = vmul.f32 %v703_v38, %v206_v34 }
  0xd9   :  { %v199_v12 = vmax.f32 %v157_v5, 0.0  ;;  %v149_v13 = vadd.f32 %v694_v27, %v148_v7  ;;  %v181_v22 = vadd.f32 %v694_v27, %v180_v16  ;;  %v249_v29 = vsel %vm70_vm0, %v221_v20, 0.0 }
  0xda   :  { %v219_v33 = vmul.f32 %v703_v38, %v196_v17  ;;  %v207_v35 = vmax.f32 %v189_v28, 0.0  ;;  %v227_v27 = vmul.f32 %v703_v38, %v204_v26  ;;  %v273_v45 = vsel %vm70_vm0, %v229_v43, 0.0 }
  0xdb   :  { %265 = vadd.xlane.f32.xlu1 %v264_v14  ;;  %256 = vadd.xlane.f32.xlu0 %v255_v10  ;;  %v197_v21 = vmax.f32 %v149_v13, 0.0  ;;  %v222_v24 = vmul.f32 %v703_v38, %v199_v12  ;;  %v205_v30 = vmax.f32 %v181_v22, 0.0 }
  0xdc   :  { %v243_v37 = vsel %vm70_vm0, %v219_v33, 0.0  ;;  %v267_v41 = vsel %vm70_vm0, %v227_v27, 0.0  ;;  %v230_v42 = vmul.f32 %v703_v38, %v207_v35 }
  0xdd   :  { %v252_v31 = vsel %vm70_vm0, %v222_v24, 0.0  ;;  %v220_v32 = vmul.f32 %v703_v38, %v197_v21  ;;  %v228_v39 = vmul.f32 %v703_v38, %v205_v30 }
  0xde   :  { %v276_v44 = vsel %vm70_vm0, %v230_v42, 0.0 }
  0xdf   :  { %259 = vadd.xlane.f32.xlu1 %v258_v19  ;;  %235 = vadd.xlane.f32.xlu0 %v234_v23  ;;  %v246_v36 = vsel %vm70_vm0, %v220_v32, 0.0  ;;  %v270_v40 = vsel %vm70_vm0, %v228_v39, 0.0 }
  0xe3   :  { %253 = vadd.xlane.f32.xlu1 %v252_v31  ;;  %250 = vadd.xlane.f32.xlu0 %v249_v29 }
  0xe7   :  { %247 = vadd.xlane.f32.xlu1 %v246_v36  ;;  %244 = vadd.xlane.f32.xlu0 %v243_v37 }
  0xeb   :  { %271 = vadd.xlane.f32.xlu1 %v270_v40  ;;  %268 = vadd.xlane.f32.xlu0 %v267_v41 }
  0xef   :  { %277 = vadd.xlane.f32.xlu1 %v276_v44  ;;  %274 = vadd.xlane.f32.xlu0 %v273_v45 }
 0x15c   :  { %v263_v47 = vpop.xlane.xlu0 %262  ;;  %v239_v48 = vpop.xlane.xlu1 %238 }
 0x15d   :  { %v752_v49 = vadd.f32 %v749_v46, %v263_v47  ;;  %v755_v50 = vadd.f32 %v749_v46, %v239_v48 }
 0x15f   :  { %v312_v38 = vand.u32 2147483647, %v752_v49  ;;  %v304_v51 = vand.u32 2147483647, %v755_v50  ;;  %vm376_vm2 = vcmp.ge.f32.partialorder %v752_v49, 0.0  ;;  %vm368_vm3 = vcmp.ge.f32.partialorder %v755_v50, 0.0 }
 0x160   :  { %v242_v52 = vpop.xlane.xlu1 %241  ;;  %v233_v53 = vpop.xlane.xlu0 %232 }
 0x161   :  { %v328_v54 = vsub.f32 0.0, %v312_v38  ;;  %v320_v55 = vsub.f32 0.0, %v304_v51  ;;  %v760_v56 = vadd.f32 %v749_v46, %v242_v52  ;;  %v763_v57 = vadd.f32 %v749_v46, %v233_v53 }
 0x163   :  { %v354_v58 = vmul.f32 1.442695, %v328_v54  ;;  %v338_v59 = vmul.f32 1.442695, %v320_v55  ;;  %v305_v60 = vand.u32 2147483647, %v760_v56 }
 0x164   :  { %v302_v61 = vand.u32 2147483647, %v763_v57  ;;  %v266_v62 = vpop.xlane.xlu1 %265  ;;  %v257_v63 = vpop.xlane.xlu0 %256  ;;  %vm369_vm4 = vcmp.ge.f32.partialorder %v760_v56, 0.0  ;;  %vm366_vm5 = vcmp.ge.f32.partialorder %v763_v57, 0.0 }
 0x165   :  { %532 = vpow2.f32 %v354_v58  ;;  %v321_v0 = vsub.f32 0.0, %v305_v60  ;;  %v768_v1 = vadd.f32 %v749_v46, %v266_v62  ;;  %v771_v2 = vadd.f32 %v749_v46, %v257_v63 }
 0x166   :  { %534 = vpow2.f32 %v338_v59  ;;  %v318_v3 = vsub.f32 0.0, %v302_v61 }
 0x167   :  { %v340_v4 = vmul.f32 1.442695, %v321_v0  ;;  %v313_v5 = vand.u32 2147483647, %v768_v1  ;;  %v310_v7 = vand.u32 2147483647, %v771_v2 }
 0x168   :  { %v334_v6 = vmul.f32 1.442695, %v318_v3  ;;  %v260_v8 = vpop.xlane.xlu1 %259  ;;  %v236_v9 = vpop.xlane.xlu0 %235  ;;  %vm377_vm6 = vcmp.ge.f32.partialorder %v768_v1, 0.0  ;;  %vm374_vm7 = vcmp.ge.f32.partialorder %v771_v2, 0.0 }
 0x169   :  { %536 = vpow2.f32 %v340_v4  ;;  %v329_v10 = vsub.f32 0.0, %v313_v5  ;;  %v776_v11 = vadd.f32 %v749_v46, %v260_v8  ;;  %v779_v12 = vadd.f32 %v749_v46, %v236_v9 }
 0x16a   :  { %538 = vpow2.f32 %v334_v6  ;;  %v326_v13 = vsub.f32 0.0, %v310_v7 }
 0x16b   :  { %v356_v14 = vmul.f32 1.442695, %v329_v10  ;;  %v311_v15 = vand.u32 2147483647, %v776_v11  ;;  %v303_v17 = vand.u32 2147483647, %v779_v12 }
 0x16c   :  { %v350_v16 = vmul.f32 1.442695, %v326_v13  ;;  %v254_v18 = vpop.xlane.xlu1 %253  ;;  %v251_v19 = vpop.xlane.xlu0 %250  ;;  %vm375_vm8 = vcmp.ge.f32.partialorder %v776_v11, 0.0  ;;  %vm367_vm9 = vcmp.ge.f32.partialorder %v779_v12, 0.0 }
 0x16d   :  { %540 = vpow2.f32 %v356_v14  ;;  %v327_v20 = vsub.f32 0.0, %v311_v15  ;;  %v784_v21 = vadd.f32 %v749_v46, %v254_v18  ;;  %v787_v22 = vadd.f32 %v749_v46, %v251_v19 }
 0x16e   :  { %542 = vpow2.f32 %v350_v16  ;;  %v319_v23 = vsub.f32 0.0, %v303_v17 }
 0x16f   :  { %v352_v24 = vmul.f32 1.442695, %v327_v20  ;;  %v309_v25 = vand.u32 2147483647, %v784_v21  ;;  %v308_v28 = vand.u32 2147483647, %v787_v22 }
 0x170   :  { %v336_v26 = vmul.f32 1.442695, %v319_v23  ;;  %v248_v29 = vpop.xlane.xlu1 %247  ;;  %v245_v30 = vpop.xlane.xlu0 %244  ;;  %vm373_vm10 = vcmp.ge.f32.partialorder %v784_v21, 0.0  ;;  %vm372_vm11 = vcmp.ge.f32.partialorder %v787_v22, 0.0 }
 0x171   :  { %544 = vpow2.f32 %v352_v24  ;;  %v325_v31 = vsub.f32 0.0, %v309_v25  ;;  %v792_v32 = vadd.f32 %v749_v46, %v248_v29  ;;  %v795_v33 = vadd.f32 %v749_v46, %v245_v30 }
 0x172   :  { %v797_v34 = vpop.eup %532  ;;  %546 = vpow2.f32 %v336_v26  ;;  %v324_v35 = vsub.f32 0.0, %v308_v28 }
 0x173   :  { %v799_v36 = vpop.eup %534  ;;  %v392_v37 = vadd.f32 1.0, %v797_v34  ;;  %v348_v39 = vmul.f32 1.442695, %v325_v31  ;;  %v307_v27 = vand.u32 2147483647, %v792_v32  ;;  %vm371_vm12 = vcmp.ge.f32.partialorder %v792_v32, 0.0 }
 0x174   :  { %v384_v40 = vadd.f32 1.0, %v799_v36  ;;  %v346_v41 = vmul.f32 1.442695, %v324_v35  ;;  %v306_v42 = vand.u32 2147483647, %v795_v33  ;;  %v272_v43 = vpop.xlane.xlu1 %271  ;;  %v269_v44 = vpop.xlane.xlu0 %268  ;;  %vm370_vm13 = vcmp.ge.f32.partialorder %v795_v33, 0.0 }
 0x175   :  { %548 = vrcp.f32 %v392_v37  ;;  %v323_v45 = vsub.f32 0.0, %v307_v27  ;;  %v806_v47 = vadd.f32 %v749_v46, %v272_v43  ;;  %v809_v48 = vadd.f32 %v749_v46, %v269_v44 }
 0x176   :  { %v811_v38 = vpop.eup %536  ;;  %550 = vrcp.f32 %v384_v40  ;;  %v322_v51 = vsub.f32 0.0, %v306_v42 }
 0x177   :  { %v813_v52 = vpop.eup %538  ;;  %v385_v53 = vadd.f32 1.0, %v811_v38  ;;  %552 = vpow2.f32 %v348_v39  ;;  %v344_v54 = vmul.f32 1.442695, %v323_v45  ;;  %v315_v55 = vand.u32 2147483647, %v806_v47 }
 0x178   :  { %v382_v58 = vadd.f32 1.0, %v813_v52  ;;  %554 = vpow2.f32 %v346_v41  ;;  %v342_v59 = vmul.f32 1.442695, %v322_v51  ;;  %v278_v60 = vpop.xlane.xlu1 %277  ;;  %v275_v61 = vpop.xlane.xlu0 %274  ;;  %v314_v63 = vand.u32 2147483647, %v809_v48 }
 0x179   :  { %556 = vrcp.f32 %v385_v53  ;;  %v331_v62 = vsub.f32 0.0, %v315_v55  ;;  %v822_v3 = vadd.f32 %v749_v46, %v278_v60  ;;  %v825_v4 = vadd.f32 %v749_v46, %v275_v61 }
 0x17a   :  { %v819_v0 = vpop.eup %540  ;;  %558 = vrcp.f32 %v382_v58  ;;  %v330_v8 = vsub.f32 0.0, %v314_v63  ;;  %vm379_vm14 = vcmp.ge.f32.partialorder %v806_v47, 0.0  ;;  %vm378_vm15 = vcmp.ge.f32.partialorder %v809_v48, 0.0 }
 0x17b   :  { %v827_v5 = vpop.eup %542  ;;  %v393_v6 = vadd.f32 1.0, %v819_v0  ;;  %560 = vpow2.f32 %v344_v54  ;;  %v360_v7 = vmul.f32 1.442695, %v331_v62  ;;  %v317_v10 = vand.u32 2147483647, %v822_v3 }
 0x17c   :  { %v390_v9 = vadd.f32 1.0, %v827_v5  ;;  %562 = vpow2.f32 %v342_v59  ;;  %v358_v13 = vmul.f32 1.442695, %v330_v8  ;;  %v316_v14 = vand.u32 2147483647, %v825_v4 }
 0x17d   :  { %564 = vrcp.f32 %v393_v6  ;;  %v333_v46 = vsub.f32 0.0, %v317_v10  ;;  %vm381_vm0 = vcmp.ge.f32.partialorder %v822_v3, 0.0 }
 0x17e   :  { %v833_v15 = vpop.eup %544  ;;  %566 = vrcp.f32 %v390_v9  ;;  %v332_v18 = vsub.f32 0.0, %v316_v14 }
 0x17f   :  { %v835_v16 = vpop.eup %546  ;;  %v391_v17 = vadd.f32 1.0, %v833_v15  ;;  %568 = vpow2.f32 %v360_v7  ;;  %v364_v20 = vmul.f32 1.442695, %v333_v46 }
 0x180   :  { %v383_v19 = vadd.f32 1.0, %v835_v16  ;;  %570 = vpow2.f32 %v358_v13  ;;  %v362_v23 = vmul.f32 1.442695, %v332_v18 }
 0x181   :  { %572 = vrcp.f32 %v391_v17 }
 0x182   :  { %v549_v24 = vpop.eup %548  ;;  %574 = vrcp.f32 %v383_v19 }
 0x183   :  { %v551_v25 = vpop.eup %550  ;;  %v440_v26 = vmul.f32 %v549_v24, %v797_v34  ;;  %576 = vpow2.f32 %v364_v20 }
 0x184   :  { %v840_v28 = vpop.eup %552  ;;  %v432_v29 = vmul.f32 %v551_v25, %v799_v36  ;;  %578 = vpow2.f32 %v362_v23 }
 0x185   :  { %v555_v30 = vpop.eup %554  ;;  %v456_v31 = vsel %vm376_vm2, %v549_v24, %v440_v26  ;;  %v389_v35 = vadd.f32 1.0, %v840_v28  ;;  %vm380_vm2 = vcmp.ge.f32.partialorder %v825_v4, 0.0 }
 0x186   :  { %v557_v37 = vpop.eup %556  ;;  %473 = vst.msk [vmem:[%s936_s5 + $0x50] sm:$0xff] %vm462_vm1, %v456_v31  ;;  %v448_v34 = vsel %vm368_vm3, %v551_v25, %v432_v29  ;;  %v388_v39 = vadd.f32 1.0, %v555_v30 }
 0x187   :  { %v559_v27 = vpop.eup %558  ;;  %465 = vst.msk [vmem:[%s936_s5 + $0x10] sm:$0xff] %vm462_vm1, %v448_v34  ;;  %v433_v49 = vmul.f32 %v557_v37, %v811_v38  ;;  %580 = vrcp.f32 %v389_v35 }
 0x188   :  { %v561_v50 = vpop.eup %560  ;;  %v430_v36 = vmul.f32 %v559_v27, %v813_v52  ;;  %582 = vrcp.f32 %v388_v39 }
 0x189   :  { %v563_v40 = vpop.eup %562  ;;  %v449_v41 = vsel %vm369_vm4, %v557_v37, %v433_v49  ;;  %v387_v42 = vadd.f32 1.0, %v561_v50 }
 0x18a   :  { %v565_v43 = vpop.eup %564  ;;  %466 = vst.msk [vmem:[%s936_s5 + $0x18] sm:$0xff] %vm462_vm1, %v449_v41  ;;  %v446_v44 = vsel %vm366_vm5, %v559_v27, %v430_v36  ;;  %v386_v45 = vadd.f32 1.0, %v563_v40 }
 0x18b   :  { %v567_v38 = vpop.eup %566  ;;  %463 = vst.msk [vmem:[%s936_s5] sm:$0xff] %vm462_vm1, %v446_v44  ;;  %v441_v56 = vmul.f32 %v565_v43, %v819_v0  ;;  %584 = vrcp.f32 %v387_v42 }
 0x18c   :  { %v569_v51 = vpop.eup %568  ;;  %v438_v57 = vmul.f32 %v567_v38, %v827_v5  ;;  %586 = vrcp.f32 %v386_v45 }
 0x18d   :  { %v571_v52 = vpop.eup %570  ;;  %v457_v53 = vsel %vm377_vm6, %v565_v43, %v441_v56  ;;  %v395_v54 = vadd.f32 1.0, %v569_v51 }
 0x18e   :  { %v573_v55 = vpop.eup %572  ;;  %474 = vst.msk [vmem:[%s936_s5 + $0x58] sm:$0xff] %vm462_vm1, %v457_v53  ;;  %v454_v58 = vsel %vm374_vm7, %v567_v38, %v438_v57  ;;  %v394_v59 = vadd.f32 1.0, %v571_v52 }
 0x18f   :  { %v575_v60 = vpop.eup %574  ;;  %471 = vst.msk [vmem:[%s936_s5 + $0x40] sm:$0xff] %vm462_vm1, %v454_v58  ;;  %v439_v1 = vmul.f32 %v573_v55, %v833_v15  ;;  %588 = vrcp.f32 %v395_v54 }
 0x190   :  { %v577_v61 = vpop.eup %576  ;;  %v431_v2 = vmul.f32 %v575_v60, %v835_v16  ;;  %590 = vrcp.f32 %v394_v59 }
 0x191   :  { %v579_v62 = vpop.eup %578  ;;  %v455_v63 = vsel %vm375_vm8, %v573_v55, %v439_v1  ;;  %v397_v0 = vadd.f32 1.0, %v577_v61 }
 0x192   :  { %472 = vst.msk [vmem:[%s936_s5 + $0x48] sm:$0xff] %vm462_vm1, %v455_v63  ;;  %v447_v5 = vsel %vm367_vm9, %v575_v60, %v431_v2  ;;  %v396_v6 = vadd.f32 1.0, %v579_v62 }
 0x193   :  { %464 = vst.msk [vmem:[%s936_s5 + $0x8] sm:$0xff] %vm462_vm1, %v447_v5  ;;  %592 = vrcp.f32 %v397_v0 }
 0x194   :  { %v581_v11 = vpop.eup %580  ;;  %594 = vrcp.f32 %v396_v6 }
 0x195   :  { %v583_v7 = vpop.eup %582  ;;  %v437_v8 = vmul.f32 %v581_v11, %v840_v28 }
 0x196   :  { %v436_v12 = vmul.f32 %v583_v7, %v555_v30 }
 0x197   :  { %v453_v9 = vsel %vm373_vm10, %v581_v11, %v437_v8 }
 0x198   :  { %v585_v10 = vpop.eup %584  ;;  %470 = vst.msk [vmem:[%s936_s5 + $0x38] sm:$0xff] %vm462_vm1, %v453_v9  ;;  %v452_v13 = vsel %vm372_vm11, %v583_v7, %v436_v12 }
 0x199   :  { %v587_v14 = vpop.eup %586  ;;  %469 = vst.msk [vmem:[%s936_s5 + $0x30] sm:$0xff] %vm462_vm1, %v452_v13  ;;  %v435_v15 = vmul.f32 %v585_v10, %v561_v50 }
 0x19a   :  { %v434_v21 = vmul.f32 %v587_v14, %v563_v40 }
 0x19b   :  { %v451_v46 = vsel %vm371_vm12, %v585_v10, %v435_v15 }
 0x19c   :  { %v589_v22 = vpop.eup %588  ;;  %468 = vst.msk [vmem:[%s936_s5 + $0x28] sm:$0xff] %vm462_vm1, %v451_v46  ;;  %v450_v16 = vsel %vm370_vm13, %v587_v14, %v434_v21 }
 0x19d   :  { %v591_v17 = vpop.eup %590  ;;  %467 = vst.msk [vmem:[%s936_s5 + $0x20] sm:$0xff] %vm462_vm1, %v450_v16  ;;  %v443_v18 = vmul.f32 %v589_v22, %v569_v51 }
 0x19e   :  { %v442_v32 = vmul.f32 %v591_v17, %v571_v52 }
 0x19f   :  { %v459_v19 = vsel %vm379_vm14, %v589_v22, %v443_v18 }
 0x1a0   :  { %v593_v33 = vpop.eup %592  ;;  %476 = vst.msk [vmem:[%s936_s5 + $0x68] sm:$0xff] %vm462_vm1, %v459_v19  ;;  %v458_v20 = vsel %vm378_vm15, %v591_v17, %v442_v32 }
 0x1a1   :  { %v595_v23 = vpop.eup %594  ;;  %475 = vst.msk [vmem:[%s936_s5 + $0x60] sm:$0xff] %vm462_vm1, %v458_v20  ;;  %v445_v24 = vmul.f32 %v593_v33, %v577_v61 }
 0x1a2   :  { %v444_v47 = vmul.f32 %v595_v23, %v579_v62 }
 0x1a3   :  { %v461_v25 = vsel %vm381_vm0, %v593_v33, %v445_v24 }
 0x1a4   :  { %478 = vst.msk [vmem:[%s936_s5 + $0x78] sm:$0xff] %vm462_vm1, %v461_v25  ;;  %v460_v48 = vsel %vm380_vm2, %v595_v23, %v444_v47 }
 0x1a5   :  { %477 = vst.msk [vmem:[%s936_s5 + $0x70] sm:$0xff] %vm462_vm1, %v460_v48 }

</bundles_post_ra>
